<compile_context>
chip_gen: v5e
topology: v5e:2x2
jax: 0.10.0
libtpu: 0.0.40
codegen_flags: <defaults>
</compile_context>

<pallas_src>
import functools
import math

import jax
import jax.numpy as jnp
from jax import lax
from jax.experimental import pallas as pl
from jax.experimental.pallas import tpu as pltpu

_EPS = 1e-15
_LOG_EPS = math.log(_EPS)  # ~ -34.5388


def _nll_elementwise(recon, target, bin_target: bool):
    """Element-wise Poisson NLL terms (f32 in / f32 out)."""
    if bin_target:
        # PyTorch:
        #   log_number = (1 - exp(-r)) / exp(-r).clamp(min=eps)
        #   term       = log(log_number.clamp(min=eps))
        # Divide-free rewrite with identical clamp semantics:
        #   (1-e)/max(e,eps) > eps   <=>   (1-e) > eps * max(e,eps)
        #   log((1-e)/max(e,eps)) = log(1-e) + min(r, -log(eps))
        e = jnp.exp(-recon)
        num = 1.0 - e
        d = jnp.maximum(e, _EPS)
        log_ln = jnp.where(
            num > _EPS * d,
            jnp.log(num) + jnp.minimum(recon, jnp.float32(-_LOG_EPS)),
            jnp.float32(_LOG_EPS),
        )
    else:
        log_ln = jnp.log(jnp.maximum(recon, _EPS))

    nll = recon - target * log_ln
    # TODO(synk): if the same `target` batch is reused across many
    # reconstructions (alternating HITF/NMF updates), this target-only term
    # (one log per element) can be precomputed once outside the kernel.
    nll = nll + target * (jnp.log(jnp.maximum(target, _EPS)) - 1.0)
    return nll


def _pnll_whole_n_kernel(recon_ref, target_ref, out_ref, *,
                         bin_target: bool, inv_n: float, lane_dense: bool):
    recon = recon_ref[...].astype(jnp.float32)
    target = target_ref[...].astype(jnp.float32)
    nll = _nll_elementwise(recon, target, bin_target)
    if lane_dense:
        # (tb,) row means written as a dense lane strip (1, tb).
        row_mean = jnp.sum(nll, axis=1) * jnp.float32(inv_n)
        out_ref[0, :] = row_mean
    else:
        out_ref[...] = jnp.sum(nll, axis=1, keepdims=True) * jnp.float32(inv_n)


def _pnll_n_tiled_kernel(recon_ref, target_ref, out_ref, *,
                         bin_target: bool, n_total: int, tn: int,
                         need_mask: bool):
    j = pl.program_id(1)
    recon = recon_ref[...].astype(jnp.float32)
    target = target_ref[...].astype(jnp.float32)

    if need_mask:
        # Zero out padded feature columns of the last N tile: recon=0,target=0
        # contributes exactly 0 to the row sum in both bin_target branches.
        col = lax.broadcasted_iota(jnp.int32, recon.shape, 1) + j * tn
        valid = col < n_total
        recon = jnp.where(valid, recon, 0.0)
        target = jnp.where(valid, target, 0.0)

    nll = _nll_elementwise(recon, target, bin_target)
    partial = jnp.sum(nll, axis=1, keepdims=True)  # (tb, 1)

    @pl.when(j == 0)
    def _():
        out_ref[...] = partial

    @pl.when(j > 0)
    def _():
        out_ref[...] = out_ref[...] + partial

    @pl.when(j == pl.num_programs(1) - 1)
    def _():
        out_ref[...] = out_ref[...] * jnp.float32(1.0 / n_total)


def poisson_negative_likelihood(reconstruction, target, bin_target: bool, *,
                                tile_bytes: int = 6 << 20,
                                vmem_limit_bytes: int = 40 << 20):
    """Pallas equivalent of PoissonNegativeLikelihood.forward.

    reconstruction, target: (B, N) arrays (f32 or bf16; math is f32).
    Returns: (B,) float32 per-sample loss (mean over dim=1).
    """
    assert reconstruction.shape == target.shape
    assert reconstruction.ndim == 2
    B, N = reconstruction.shape
    itemsize = jnp.dtype(reconstruction.dtype).itemsize
    sub = {4: 8, 2: 16, 1: 32}.get(itemsize, 8)   # sublane granularity
    bytes_per_row = N * itemsize

    cost = pl.CostEstimate(
        flops=10 * B * N,
        transcendentals=(3 if bin_target else 2) * B * N,
        bytes_accessed=2 * B * N * itemsize + B * 4,
    )

    if sub * bytes_per_row <= tile_bytes:
        # ---- whole-N path: full feature axis in one block, tile the batch.
        rows_fit = max(sub, tile_bytes // bytes_per_row)
        # Cap so the batch axis splits into >= ~4 grid steps when B allows
        # (keeps both v7x TensorCores busy on the "parallel" axis).
        tb = min(rows_fit, max(sub, -(-B // 4)))
        if tb >= B:
            tb = B                 # single step; block == full array dims
            lane_dense = True
        elif tb >= 128:
            tb = (tb // 128) * 128  # lane-dense (1, tb) store needs tb % 128 == 0
            lane_dense = True
        else:
            tb = max(sub, (tb // sub) * sub)
            lane_dense = False
        grid = (pl.cdiv(B, tb),)

        kernel = functools.partial(_pnll_whole_n_kernel,
                                   bin_target=bool(bin_target),
                                   inv_n=1.0 / N,
                                   lane_dense=lane_dense)
        if lane_dense:
            out_shape = jax.ShapeDtypeStruct((1, B), jnp.float32)
            out_spec = pl.BlockSpec((1, tb), lambda i: (0, i))
        else:
            out_shape = jax.ShapeDtypeStruct((B, 1), jnp.float32)
            out_spec = pl.BlockSpec((tb, 1), lambda i: (i, 0))

        out = pl.pallas_call(
            kernel,
            out_shape=out_shape,
            grid=grid,
            in_specs=[
                pl.BlockSpec((tb, N), lambda i: (i, 0)),
                pl.BlockSpec((tb, N), lambda i: (i, 0)),
            ],
            out_specs=out_spec,
            compiler_params=pltpu.CompilerParams(
                dimension_semantics=("parallel",),
                vmem_limit_bytes=vmem_limit_bytes,
            ),
            cost_estimate=cost,
        )(reconstruction, target)
        return out[0, :] if lane_dense else out[:, 0]

    # ---- N-tiled fallback: very wide feature axis; accumulate row sums
    # across N tiles into the resident output block.
    tb = min(sub, B)
    tn = max(128, (tile_bytes // (tb * itemsize)) // 128 * 128)
    need_mask = (N % tn) != 0
    grid = (pl.cdiv(B, tb), pl.cdiv(N, tn))

    kernel = functools.partial(_pnll_n_tiled_kernel,
                               bin_target=bool(bin_target),
                               n_total=N, tn=tn, need_mask=need_mask)

    out = pl.pallas_call(
        kernel,
        out_shape=jax.ShapeDtypeStruct((B, 1), jnp.float32),
        grid=grid,
        in_specs=[
            pl.BlockSpec((tb, tn), lambda i, j: (i, j)),
            pl.BlockSpec((tb, tn), lambda i, j: (i, j)),
        ],
        out_specs=pl.BlockSpec((tb, 1), lambda i, j: (i, 0)),
        compiler_params=pltpu.CompilerParams(
            dimension_semantics=("parallel", "arbitrary"),
            vmem_limit_bytes=vmem_limit_bytes,
        ),
        cost_estimate=cost,
    )(reconstruction, target)
    return out[:, 0]


def _reference(reconstruction, target, bin_target: bool):
    # Pure-JAX mirror of the PyTorch forward (including clamp behavior).
    r = reconstruction.astype(jnp.float32)
    t = target.astype(jnp.float32)
    if bin_target:
        e = jnp.exp(-r)
        log_number = (1.0 - e) / jnp.maximum(e, _EPS)
    else:
        log_number = r
    nll = r - t * jnp.log(jnp.maximum(log_number, _EPS))
    nll = nll + t * (jnp.log(jnp.maximum(t, _EPS)) - 1.0)
    return jnp.mean(nll, axis=1)


if __name__ == "__main__":
    key = jax.random.PRNGKey(0)
    k1, k2 = jax.random.split(key)

    ok = True
    cases = [
        ((8, 256), {}),                            # single step, lane-dense out
        ((12, 384), {}),                           # partial batch tile, skinny out
        ((512, 128), {}),                          # multi-step lane-dense (tb=128)
        ((12, 4096), dict(tile_bytes=1 << 16)),    # N-tiled accumulator path
        ((12, 4000), dict(tile_bytes=1 << 16)),    # N-tiled + partial-N mask
    ]
    for (B, N), kw in cases:
        recon = jax.random.uniform(k1, (B, N), jnp.float32, minval=-1.0, maxval=3.0)
        # Edge cases for the clamp paths: zero, negative, large, tiny recon.
        recon = (recon.at[0, 0].set(0.0)
                      .at[0, 1].set(-2.0)
                      .at[0, 2].set(40.0)
                      .at[0, 3].set(1e-8))
        target = jnp.floor(
            jax.random.uniform(k2, (B, N), jnp.float32, minval=0.0, maxval=5.0)
        )
        for bin_target in (False, True):
            out = jax.block_until_ready(
                poisson_negative_likelihood(recon, target, bin_target, **kw)
            )
            ref = _reference(recon, target, bin_target)
            if not jnp.allclose(out, ref, rtol=1e-5, atol=1e-4):
                ok = False

    print("KERNEL_OK" if ok else "KERNEL_MISMATCH")
</pallas_src>

<mosaic_0001>
module attributes {stable_mosaic.version = 11 : i64} {
  func.func @_pnll_whole_n_kernel(%arg0: i32, %arg1: memref<8x256xf32, #tpu.memory_space<vmem>>, %arg2: memref<8x256xf32, #tpu.memory_space<vmem>>, %arg3: memref<1x8xf32, #tpu.memory_space<vmem>>) attributes {dimension_semantics = [#tpu.dimension_semantics<parallel>], iteration_bounds = array<i64: 1>, scalar_prefetch = 0 : i64, scratch_operands = 0 : i64, tpu.core_type = #tpu.core_type<tc>, window_params = [{transform_indices = @transform_0, window_bounds = array<i64: 8, 256>}, {transform_indices = @transform_1, window_bounds = array<i64: 8, 256>}, {transform_indices = @transform_2, window_bounds = array<i64: 1, 8>}]} {
    %c0 = arith.constant 0 : index
    %c0_0 = arith.constant 0 : index
    %0 = vector.load %arg1[%c0, %c0_0] : memref<8x256xf32, #tpu.memory_space<vmem>>, vector<8x256xf32>
    %c0_1 = arith.constant 0 : index
    %c0_2 = arith.constant 0 : index
    %1 = vector.load %arg2[%c0_1, %c0_2] : memref<8x256xf32, #tpu.memory_space<vmem>>, vector<8x256xf32>
    %cst = arith.constant 1.000000e-15 : f32
    %2 = vector.broadcast %cst : f32 to vector<8x256xf32>
    %3 = arith.maximumf %0, %2 : vector<8x256xf32>
    %4 = math.log %3 : vector<8x256xf32>
    %5 = arith.mulf %1, %4 : vector<8x256xf32>
    %6 = arith.subf %0, %5 : vector<8x256xf32>
    %cst_3 = arith.constant 1.000000e-15 : f32
    %7 = vector.broadcast %cst_3 : f32 to vector<8x256xf32>
    %8 = arith.maximumf %1, %7 : vector<8x256xf32>
    %9 = math.log %8 : vector<8x256xf32>
    %cst_4 = arith.constant 1.000000e+00 : f32
    %10 = vector.broadcast %cst_4 : f32 to vector<8x256xf32>
    %11 = arith.subf %9, %10 : vector<8x256xf32>
    %12 = arith.mulf %1, %11 : vector<8x256xf32>
    %13 = arith.addf %6, %12 : vector<8x256xf32>
    %cst_5 = arith.constant dense<0.000000e+00> : vector<8xf32>
    %14 = vector.multi_reduction <add>, %13, %cst_5 [1] : vector<8x256xf32> to vector<8xf32>
    %cst_6 = arith.constant 3.906250e-03 : f32
    %15 = vector.broadcast %cst_6 : f32 to vector<8xf32>
    %16 = arith.mulf %14, %15 : vector<8xf32>
    %c0_7 = arith.constant 0 : index
    %c0_8 = arith.constant 0 : index
    %17 = vector.load %arg3[%c0_7, %c0_8] : memref<1x8xf32, #tpu.memory_space<vmem>>, vector<1x8xf32>
    %18 = vector.shape_cast %17 : vector<1x8xf32> to vector<8xf32>
    %19 = vector.shape_cast %16 : vector<8xf32> to vector<1x8xf32>
    tpu.vector_store %arg3[%c0_7, %c0_8], %19 {strides = array<i32>} : memref<1x8xf32, #tpu.memory_space<vmem>>, vector<1x8xf32>,
    return
  }
  func.func @transform_0(%arg0: i32) -> (i32, i32) {
    %c0_i32 = arith.constant 0 : i32
    %c0_i32_0 = arith.constant 0 : i32
    return %arg0, %c0_i32 : i32, i32
  }
  func.func @transform_1(%arg0: i32) -> (i32, i32) {
    %c0_i32 = arith.constant 0 : i32
    %c0_i32_0 = arith.constant 0 : i32
    return %arg0, %c0_i32 : i32, i32
  }
  func.func @transform_2(%arg0: i32) -> (i32, i32) {
    %c0_i32 = arith.constant 0 : i32
    %c0_i32_0 = arith.constant 0 : i32
    return %c0_i32, %arg0 : i32, i32
  }
}

</mosaic_0001>

<bundles_post_ra>
// kernel: tpu_custom_call.1
= control target key start
LH: loop header
LB: loop body
LE: loop exit
PB: predicated region body
PF: predicated region fallthrough
CT: control target
= control target key end

     0   :  { %7 = vsyncpa [#allocation3], 0  ;;  %s213_s0 = inlined_call_operand.hbm [shape: f32[8,256], index: 0, kind: input, shape index: {}]   ;;  %s214_s1 = inlined_call_operand.hbm [shape: f32[8,256], index: 1, kind: input, shape index: {}]   ;;  %s215_s2 = inlined_call_operand.hbm [shape: f32[1,8], index: 2, kind: output, shape index: {}]  }
   0x1   :  { %8 = vsyncpa [#allocation6], 0 }
   0x2   :  { %9 = vsyncpa [#allocation4], 0  ;;  %s15_s11 = sshll.u32 %s213_s0, 4  ;;  %s186_s12 = smov [#allocation2]   ;;  %s16_s11 = int_to_ptr.hbm [resolvable:$true] %s15_s11 }
   0x3   :  { %s17_s13 = sshll.u32 %s186_s12, 4  ;;  %s26_s16 = sshll.u32 %s214_s1, 4  ;;  %s18_s13 = int_to_ptr.vmem [resolvable:$true] %s17_s13  ;;  %s27_s16 = int_to_ptr.hbm [resolvable:$true] %s26_s16 }
   0x4   :  { %20 = dma.hbm_to_vmem [thread:$0]  %s16_s11, 256, %s18_s13, [#allocation3]  }
   0x5   :  { %s187_s17 = smov [#allocation5]  }
   0x6   :  { %s28_s18 = sshll.u32 %s187_s17, 4  ;;  %s29_s18 = int_to_ptr.vmem [resolvable:$true] %s28_s18 }
   0x7   :  { %31 = dma.hbm_to_vmem [thread:$0]  %s27_s16, 256, %s29_s18, [#allocation6]  }
   0x8   :  { %180 = dma.done.wait [#allocation3], 256  }
   0x9   :  { %181 = vsyncadd [#allocation3], 4294967040 }
   0xa   :  { %182 = dma.done.wait [#allocation6], 256  }
   0xb   :  { %183 = vsyncadd [#allocation6], 4294967040  ;;  %v40_v0 = vld [vmem:[#allocation2] sm:$0xff]  ;;  %v41_v1 = vld [vmem:[#allocation2 + $0x8] sm:$0xff]  ;;  %v71_v27 = vlaneseq  ;;  %s188_s0 = smov [#allocation7]   ;;  %s84_s21 = sshll.u32 %s215_s2, 4  ;;  %s85_s21 = int_to_ptr.hbm [resolvable:$true] %s84_s21 }
   0xc   :  { %v42_v2 = vld [vmem:[#allocation5] sm:$0xff]  ;;  %v43_v3 = vld [vmem:[#allocation5 + $0x8] sm:$0xff]  ;;  %v44_v4 = vmax.f32 %v40_v0, 1e-15  ;;  %v45_v5 = vmax.f32 %v41_v1, 1e-15 }
   0xd   :  { %v54_v6 = vmax.f32 %v42_v2, 1e-15  ;;  %v55_v7 = vmax.f32 %v43_v3, 1e-15  ;;  %v72_v28 = vand.u32 127, %v71_v27  ;;  %s82_s1 = sshll.u32 %s188_s0, 4  ;;  %s83_s1 = int_to_ptr.vmem [resolvable:$true] %s82_s1 }
   0xe   :  { %100 = vlog2.f32 %v44_v4  ;;  %vm75_vm0 = vcmask 57344  }
   0xf   :  { %102 = vlog2.f32 %v45_v5 }
  0x10   :  { %104 = vlog2.f32 %v54_v6 }
  0x11   :  { %106 = vlog2.f32 %v55_v7 }
  0x14   :  { %v101_v8 = vpop.eup %100 }
  0x15   :  { %v103_v9 = vpop.eup %102  ;;  %v47_v10 = vmul.f32 0.6931472, %v101_v8 }
  0x16   :  { %v105_v11 = vpop.eup %104  ;;  %v49_v12 = vmul.f32 0.6931472, %v103_v9 }
  0x17   :  { %v107_v13 = vpop.eup %106  ;;  %v50_v14 = vmul.f32 %v47_v10, %v42_v2  ;;  %v57_v15 = vmul.f32 0.6931472, %v105_v11 }
  0x18   :  { %v51_v16 = vmul.f32 %v49_v12, %v43_v3  ;;  %v59_v17 = vmul.f32 0.6931472, %v107_v13 }
  0x19   :  { %v52_v18 = vsub.f32 %v40_v0, %v50_v14  ;;  %v95_v19 = vadd.f32 -1.0, %v57_v15 }
  0x1a   :  { %v53_v20 = vsub.f32 %v41_v1, %v51_v16  ;;  %v96_v21 = vadd.f32 -1.0, %v59_v17 }
  0x1b   :  { %v62_v22 = vmul.f32 %v95_v19, %v42_v2 }
  0x1c   :  { %v63_v23 = vmul.f32 %v96_v21, %v43_v3 }
  0x1d   :  { %v64_v24 = vadd.f32 %v62_v22, %v52_v18 }
  0x1e   :  { %v65_v25 = vadd.f32 %v63_v23, %v53_v20 }
  0x20   :  { %v66_v26 = vadd.f32 %v65_v25, %v64_v24 }
  0x22   :  { %67 = vadd.xlane.f32.xlu0 %v66_v26 }
  0x95   :  { %v68_v29 = vpop.xlane.xlu0 %67 }
  0x96   :  { %v69_v30 = vmul.f32 0.00390625, %v68_v29 }
  0x98   :  { %v73_v31 = vperm.slane %v69_v30, %v72_v28 }
  0x9a   :  { %76 = vst.msk [vmem:[#allocation7] sm:$0x1] %vm75_vm0, %v73_v31 }
  0x9b   :  { %87 = dma.vmem_to_hbm [thread:$0]  %s83_s1, 16, %s85_s21, [#allocation4]  }
  0x9c   :  { %184 = dma.done.wait [#allocation4], 16  }
  0x9d   :  { %185 = vsyncadd [#allocation4], 4294967280 }
  0x9e   :  { %92 = vsyncpa [#allocation3], 1 }
  0x9f   :  { %93 = vsyncpa [#allocation6], 1 }
  0xa0   :  { %94 = vsyncpa [#allocation4], 1 }

</bundles_post_ra>
